<compile_context>
chip_gen: v7x
topology: tpu7x:2x2x1
jax: 0.10.0
libtpu: 0.0.40
codegen_flags: <defaults>
</compile_context>

<pallas_src>
import functools

import jax
import jax.numpy as jnp
from jax.experimental import pallas as pl
from jax.experimental.pallas import tpu as pltpu


def _round_up(x, m):
    return ((x + m - 1) // m) * m


def _cdiv(a, b):
    return -(-a // b)


def _mle_loss_kernel(ts_ref, est_mean_ref, est_std_ref,
                     col_ts_ref, s1_ref, s2_ref, ehat_ref, lm_ref,
                     *, n_rows, n_cols, block_rows):
    p = pl.program_id(0)          # parallel split (megacore on v7x)
    s = pl.program_id(1)          # streaming step within the split
    steps = pl.num_programs(1)

    # cdiv grid => the tail block (and any clamped overhang step of the last
    # split) contains rows >= n_rows; mask them by logical row index.
    row_start = (p * steps + s) * block_rows
    row_ids = jax.lax.broadcasted_iota(jnp.int32, (block_rows, 1), 0) + row_start
    valid = row_ids < n_rows                                           # (tm, 1)

    ts = jnp.where(valid, ts_ref[...].astype(jnp.float32), 0.0)        # (tm, T)
    d = jnp.where(valid, est_std_ref[...].astype(jnp.float32), 0.0)    # (tm, T)
    m = jnp.where(valid, est_mean_ref[...].astype(jnp.float32), 0.0)   # (tm, 1)

    a = jnp.sum(ts, axis=-1, keepdims=True) * (1.0 / float(n_cols))    # row means
    e = a * a + d * d                                  # mle_mean^2 + est_std^2

    @pl.when(s == 0)
    def _init():
        col_ts_ref[...] = jnp.zeros_like(col_ts_ref)
        s1_ref[...] = jnp.zeros_like(s1_ref)
        s2_ref[...] = jnp.zeros_like(s2_ref)
        lm_ref[...] = jnp.zeros_like(lm_ref)
        # Per-split shift: first (always valid) row of e.  Keeps the running
        # sums small near convergence -> no catastrophic cancellation.
        ehat_ref[...] = e[0:1, :][None]

    ehat = ehat_ref[...][0]                             # (1, T)
    u = jnp.where(valid, e - ehat, 0.0)                 # shifted e, tail-masked

    # Raw sums only in the hot loop; all divides happen once in the wrapper.
    col_ts_ref[...] += jnp.sum(ts, axis=0, keepdims=True)[None]
    s1_ref[...] += jnp.sum(u, axis=0, keepdims=True)[None]
    s2_ref[...] += jnp.sum(u * u, axis=0, keepdims=True)[None]
    diff = jnp.where(valid, a - m, 0.0)
    lm_ref[...] += jnp.sum(diff * diff, axis=0, keepdims=True)[None]


def _vmem_limit_bytes():
    """Generation-aware scoped-VMEM limit (v7x: 64 MiB/TC, v5e/v6e: 128 MiB)."""
    try:
        cap = int(pltpu.get_tpu_info().vmem_capacity_bytes)
    except Exception:
        try:
            kind = jax.devices()[0].device_kind.lower()
            cap = 64 * 1024 * 1024 if "v7" in kind else 128 * 1024 * 1024
        except Exception:
            cap = 64 * 1024 * 1024
    return min(int(0.70 * cap), 100 * 1024 * 1024)


def _pick_block_rows(n, t, in_dtype_bytes, vmem_limit_bytes):
    """Byte-budgeted row tile: ~8 MiB streamed HBM bytes/step, VMEM-capped."""
    sub = 8 if in_dtype_bytes >= 4 else 16
    if n <= sub:
        return n                      # full-height block (block dim == array dim)
    lanes = _round_up(t, 128)
    # Lane-padded VMEM bytes per row: ts + est_std tiles + est_mean strip.
    row_bytes_vmem = 2 * in_dtype_bytes * lanes + 4 * 128
    # HBM bytes actually streamed per row (what bounds the kernel).
    row_bytes_hbm = 2 * in_dtype_bytes * t + 4
    tm_target = (8 * 1024 * 1024) // max(row_bytes_hbm, 1)
    tm_vmem = int(0.6 * vmem_limit_bytes) // (2 * row_bytes_vmem)  # double-buffered
    tm = min(tm_target, tm_vmem, n)
    return max(sub, (tm // sub) * sub)


def mle_loss(ts, est_mean, est_std, *, block_rows=None, cast_inputs_to_bf16=False):
    n, t = ts.shape
    assert est_mean.shape == (n, 1), est_mean.shape
    assert est_std.shape == (n, t), est_std.shape

    if cast_inputs_to_bf16:
        # Bandwidth-bound kernel: bf16 inputs halve HBM traffic (kernel upcasts
        # to f32 before accumulating).  Off by default to keep f32 semantics.
        ts = ts.astype(jnp.bfloat16)
        est_std = est_std.astype(jnp.bfloat16)
    est_mean = est_mean.astype(jnp.float32)

    in_bytes = ts.dtype.itemsize
    sub = 8 if in_bytes >= 4 else 16
    vmem_limit = _vmem_limit_bytes()

    if block_rows is None:
        tm = _pick_block_rows(n, t, in_bytes, vmem_limit)
    elif n <= sub:
        tm = n
    else:
        tm = max(sub, (min(int(block_rows), n) // sub) * sub)

    blocks = _cdiv(n, tm)
    # Two-way row split: feeds both v7x TensorCores; near-free on v5e/v6e.
    num_splits = 2 if blocks >= 2 else 1
    steps = _cdiv(blocks, num_splits)

    def row_block(pidx, sidx):
        # Clamp so overhang steps of the last split never issue an OOB DMA;
        # their rows are masked inside the kernel anyway.
        return (jnp.minimum(pidx * steps + sidx, blocks - 1), 0)

    kernel = functools.partial(_mle_loss_kernel, n_rows=n, n_cols=t, block_rows=tm)

    col_shape = jax.ShapeDtypeStruct((num_splits, 1, t), jnp.float32)
    col_spec = pl.BlockSpec((1, 1, t), lambda pidx, sidx: (pidx, 0, 0))
    out_shape = (col_shape, col_shape, col_shape, col_shape,
                 jax.ShapeDtypeStruct((num_splits, 1, 1), jnp.float32))
    out_specs = (col_spec, col_spec, col_spec, col_spec,
                 pl.BlockSpec((1, 1, 1), lambda pidx, sidx: (pidx, 0, 0)))

    col_ts, s1, s2, ehat, lm = pl.pallas_call(
        kernel,
        out_shape=out_shape,
        grid_spec=pltpu.PrefetchScalarGridSpec(
            num_scalar_prefetch=0,
            grid=(num_splits, steps),
            in_specs=[
                pl.BlockSpec((tm, t), row_block),   # ts        (streamed)
                pl.BlockSpec((tm, 1), row_block),   # est_mean  (tiny strip)
                pl.BlockSpec((tm, t), row_block),   # est_std   (streamed)
            ],
            out_specs=out_specs,
        ),
        compiler_params=pltpu.CompilerParams(
            dimension_semantics=("parallel", "arbitrary"),
            vmem_limit_bytes=vmem_limit,
        ),
    )(ts, est_mean, est_std)

    # Tiny XLA epilogue: combine per-split partials, apply all divides once.
    n_f = float(n)
    t_f = float(t)
    c = jnp.sum(col_ts, axis=0) / n_f                    # (1, T) column means of ts
    rows_per_split = steps * tm
    n_p = jnp.clip(n - rows_per_split * jnp.arange(num_splits), 0, rows_per_split)
    n_p = n_p.astype(jnp.float32).reshape(num_splits, 1, 1)
    cp = c[None] - ehat                                  # (num_splits, 1, T)
    loss_std = jnp.sum(n_p * cp * cp - 2.0 * cp * s1 + s2) / (n_f * t_f)
    loss_mean = jnp.sum(lm) / n_f
    return loss_mean + loss_std


def mle_loss_ref(ts, est_mean, est_std):
    # Literal transcription of the PyTorch forward (same broadcasting rules).
    mle_mean = jnp.mean(ts, axis=-1)[..., None]                 # (N, 1)
    mle_val = jnp.mean(ts - mle_mean[..., None] ** 2, axis=1)   # (N, T)
    loss_mean = jnp.mean((mle_mean - est_mean) ** 2)
    loss_std = jnp.mean((mle_val - est_std ** 2) ** 2)
    return loss_mean + loss_std


if __name__ == "__main__":
    key = jax.random.PRNGKey(0)
    k1, k2, k3 = jax.random.split(key, 3)

    N, T = 200, 24   # deliberately not tile-aligned: exercises cdiv + masking
    ts = jax.random.normal(k1, (N, T), dtype=jnp.float32)
    est_mean = jax.random.normal(k2, (N, 1), dtype=jnp.float32)
    est_std = jax.random.normal(k3, (N, T), dtype=jnp.float32)

    ref = mle_loss_ref(ts, est_mean, est_std)

    # Multi-tile, two-split path (partial tail block + clamped overhang step).
    out_tiled = jax.block_until_ready(mle_loss(ts, est_mean, est_std, block_rows=32))
    assert jnp.allclose(out_tiled, ref, rtol=2e-4, atol=1e-5), (out_tiled, ref)

    # Default byte-budgeted path (single full block at this small size).
    out_auto = jax.block_until_ready(mle_loss(ts, est_mean, est_std))
    assert jnp.allclose(out_auto, ref, rtol=2e-4, atol=1e-5), (out_auto, ref)

    # Optional bf16-input path (halves HBM traffic); compared against a
    # reference that sees the same bf16-rounded inputs.
    ref_bf16 = mle_loss_ref(ts.astype(jnp.bfloat16).astype(jnp.float32),
                            est_mean,
                            est_std.astype(jnp.bfloat16).astype(jnp.float32))
    out_bf16 = jax.block_until_ready(
        mle_loss(ts, est_mean, est_std, cast_inputs_to_bf16=True))
    assert jnp.allclose(out_bf16, ref_bf16, rtol=1e-3, atol=1e-4), (out_bf16, ref_bf16)

    print("KERNEL_OK")
</pallas_src>

<mosaic_0001>
module attributes {stable_mosaic.version = 11 : i64} {
  func.func @_mle_loss_kernel(%arg0: i32, %arg1: i32, %arg2: memref<32x24xf32, #tpu.memory_space<vmem>>, %arg3: memref<32x1xf32, #tpu.memory_space<vmem>>, %arg4: memref<32x24xf32, #tpu.memory_space<vmem>>, %arg5: memref<1x1x24xf32, #tpu.memory_space<vmem>>, %arg6: memref<1x1x24xf32, #tpu.memory_space<vmem>>, %arg7: memref<1x1x24xf32, #tpu.memory_space<vmem>>, %arg8: memref<1x1x24xf32, #tpu.memory_space<vmem>>, %arg9: memref<1x1x1xf32, #tpu.memory_space<vmem>>) attributes {dimension_semantics = [#tpu.dimension_semantics<parallel>, #tpu.dimension_semantics<arbitrary>], iteration_bounds = array<i64: 2, 4>, scalar_prefetch = 0 : i64, scratch_operands = 0 : i64, tpu.core_type = #tpu.core_type<tc>, window_params = [{transform_indices = @transform_0, window_bounds = array<i64: 32, 24>}, {transform_indices = @transform_1, window_bounds = array<i64: 32, 1>}, {transform_indices = @transform_2, window_bounds = array<i64: 32, 24>}, {transform_indices = @transform_3, window_bounds = array<i64: 1, 1, 24>}, {transform_indices = @transform_4, window_bounds = array<i64: 1, 1, 24>}, {transform_indices = @transform_5, window_bounds = array<i64: 1, 1, 24>}, {transform_indices = @transform_6, window_bounds = array<i64: 1, 1, 24>}, {transform_indices = @transform_7, window_bounds = array<i64: 1, 1, 1>}]} {
    %c4_i32 = arith.constant 4 : i32
    %0 = arith.muli %arg0, %c4_i32 : i32
    %1 = arith.addi %0, %arg1 : i32
    %c32_i32 = arith.constant 32 : i32
    %2 = arith.muli %1, %c32_i32 : i32
    %3 = tpu.iota {dimensions = array<i32: 0>} : vector<32x1xi32>
    %4 = vector.broadcast %2 : i32 to vector<32x1xi32>
    %5 = arith.addi %3, %4 : vector<32x1xi32>
    %c200_i32 = arith.constant 200 : i32
    %6 = vector.broadcast %c200_i32 : i32 to vector<32x1xi32>
    %7 = arith.cmpi slt, %5, %6 : vector<32x1xi32>
    %c0 = arith.constant 0 : index
    %c0_0 = arith.constant 0 : index
    %8 = vector.load %arg2[%c0, %c0_0] : memref<32x24xf32, #tpu.memory_space<vmem>>, vector<32x24xf32>
    %cst = arith.constant 0.000000e+00 : f32
    %9 = vector.shape_cast %7 : vector<32x1xi1> to vector<32x1xi1>
    %10 = vector.broadcast %9 : vector<32x1xi1> to vector<32x24xi1>
    %11 = vector.broadcast %cst : f32 to vector<32x24xf32>
    %12 = arith.select %10, %8, %11 : vector<32x24xi1>, vector<32x24xf32>
    %c0_1 = arith.constant 0 : index
    %c0_2 = arith.constant 0 : index
    %13 = vector.load %arg4[%c0_1, %c0_2] : memref<32x24xf32, #tpu.memory_space<vmem>>, vector<32x24xf32>
    %cst_3 = arith.constant 0.000000e+00 : f32
    %14 = vector.shape_cast %7 : vector<32x1xi1> to vector<32x1xi1>
    %15 = vector.broadcast %14 : vector<32x1xi1> to vector<32x24xi1>
    %16 = vector.broadcast %cst_3 : f32 to vector<32x24xf32>
    %17 = arith.select %15, %13, %16 : vector<32x24xi1>, vector<32x24xf32>
    %c0_4 = arith.constant 0 : index
    %c0_5 = arith.constant 0 : index
    %18 = vector.load %arg3[%c0_4, %c0_5] : memref<32x1xf32, #tpu.memory_space<vmem>>, vector<32x1xf32>
    %cst_6 = arith.constant 0.000000e+00 : f32
    %19 = vector.broadcast %cst_6 : f32 to vector<32x1xf32>
    %20 = arith.select %7, %18, %19 : vector<32x1xi1>, vector<32x1xf32>
    %cst_7 = arith.constant dense<0.000000e+00> : vector<32xf32>
    %21 = vector.multi_reduction <add>, %12, %cst_7 [1] : vector<32x24xf32> to vector<32xf32>
    %22 = vector.shape_cast %21 : vector<32xf32> to vector<32x1xf32>
    %cst_8 = arith.constant 0.0416666679 : f32
    %23 = vector.broadcast %cst_8 : f32 to vector<32x1xf32>
    %24 = arith.mulf %22, %23 : vector<32x1xf32>
    %25 = arith.mulf %24, %24 : vector<32x1xf32>
    %26 = arith.mulf %17, %17 : vector<32x24xf32>
    %27 = vector.broadcast %25 : vector<32x1xf32> to vector<32x24xf32>
    %28 = arith.addf %27, %26 : vector<32x24xf32>
    %c0_i32 = arith.constant 0 : i32
    %29 = arith.cmpi eq, %arg1, %c0_i32 : i32
    %30 = arith.extui %29 : i1 to i32
    %c0_i32_9 = arith.constant 0 : i32
    %31 = arith.cmpi ne, %30, %c0_i32_9 : i32
    scf.if %31 {
      %cst_43 = arith.constant 0.000000e+00 : f32
      %69 = vector.broadcast %cst_43 : f32 to vector<1x1x24xf32>
      %c0_44 = arith.constant 0 : index
      %c0_45 = arith.constant 0 : index
      %c0_46 = arith.constant 0 : index
      %70 = vector.load %arg5[%c0_44, %c0_45, %c0_46] : memref<1x1x24xf32, #tpu.memory_space<vmem>>, vector<1x1x24xf32>
      tpu.vector_store %arg5[%c0_44, %c0_45, %c0_46], %69 {strides = array<i32>} : memref<1x1x24xf32, #tpu.memory_space<vmem>>, vector<1x1x24xf32>,
      %cst_47 = arith.constant 0.000000e+00 : f32
      %71 = vector.broadcast %cst_47 : f32 to vector<1x1x24xf32>
      %c0_48 = arith.constant 0 : index
      %c0_49 = arith.constant 0 : index
      %c0_50 = arith.constant 0 : index
      %72 = vector.load %arg6[%c0_48, %c0_49, %c0_50] : memref<1x1x24xf32, #tpu.memory_space<vmem>>, vector<1x1x24xf32>
      tpu.vector_store %arg6[%c0_48, %c0_49, %c0_50], %71 {strides = array<i32>} : memref<1x1x24xf32, #tpu.memory_space<vmem>>, vector<1x1x24xf32>,
      %cst_51 = arith.constant 0.000000e+00 : f32
      %73 = vector.broadcast %cst_51 : f32 to vector<1x1x24xf32>
      %c0_52 = arith.constant 0 : index
      %c0_53 = arith.constant 0 : index
      %c0_54 = arith.constant 0 : index
      %74 = vector.load %arg7[%c0_52, %c0_53, %c0_54] : memref<1x1x24xf32, #tpu.memory_space<vmem>>, vector<1x1x24xf32>
      tpu.vector_store %arg7[%c0_52, %c0_53, %c0_54], %73 {strides = array<i32>} : memref<1x1x24xf32, #tpu.memory_space<vmem>>, vector<1x1x24xf32>,
      %cst_55 = arith.constant 0.000000e+00 : f32
      %75 = vector.broadcast %cst_55 : f32 to vector<1x1x1xf32>
      %c0_56 = arith.constant 0 : index
      %c0_57 = arith.constant 0 : index
      %c0_58 = arith.constant 0 : index
      %76 = vector.load %arg9[%c0_56, %c0_57, %c0_58] : memref<1x1x1xf32, #tpu.memory_space<vmem>>, vector<1x1x1xf32>
      tpu.vector_store %arg9[%c0_56, %c0_57, %c0_58], %75 {strides = array<i32>} : memref<1x1x1xf32, #tpu.memory_space<vmem>>, vector<1x1x1xf32>,
      %77 = vector.extract_strided_slice %28 {offsets = [0, 0], sizes = [1, 24], strides = [1, 1]} : vector<32x24xf32> to vector<1x24xf32>
      %78 = vector.shape_cast %77 : vector<1x24xf32> to vector<1x1x24xf32>
      %c0_59 = arith.constant 0 : index
      %c0_60 = arith.constant 0 : index
      %c0_61 = arith.constant 0 : index
      %79 = vector.load %arg8[%c0_59, %c0_60, %c0_61] : memref<1x1x24xf32, #tpu.memory_space<vmem>>, vector<1x1x24xf32>
      tpu.vector_store %arg8[%c0_59, %c0_60, %c0_61], %78 {strides = array<i32>} : memref<1x1x24xf32, #tpu.memory_space<vmem>>, vector<1x1x24xf32>,
    } else {
    }
    %c0_10 = arith.constant 0 : index
    %c0_11 = arith.constant 0 : index
    %c0_12 = arith.constant 0 : index
    %32 = vector.load %arg8[%c0_10, %c0_11, %c0_12] : memref<1x1x24xf32, #tpu.memory_space<vmem>>, vector<1x1x24xf32>
    %33 = vector.shape_cast %32 : vector<1x1x24xf32> to vector<1x24xf32>
    %34 = vector.broadcast %33 : vector<1x24xf32> to vector<32x24xf32>
    %35 = arith.subf %28, %34 : vector<32x24xf32>
    %cst_13 = arith.constant 0.000000e+00 : f32
    %36 = vector.shape_cast %7 : vector<32x1xi1> to vector<32x1xi1>
    %37 = vector.broadcast %36 : vector<32x1xi1> to vector<32x24xi1>
    %38 = vector.broadcast %cst_13 : f32 to vector<32x24xf32>
    %39 = arith.select %37, %35, %38 : vector<32x24xi1>, vector<32x24xf32>
    %c0_14 = arith.constant 0 : index
    %c0_15 = arith.constant 0 : index
    %c0_16 = arith.constant 0 : index
    %40 = vector.load %arg5[%c0_14, %c0_15, %c0_16] : memref<1x1x24xf32, #tpu.memory_space<vmem>>, vector<1x1x24xf32>
    %cst_17 = arith.constant dense<0.000000e+00> : vector<24xf32>
    %41 = vector.multi_reduction <add>, %12, %cst_17 [0] : vector<32x24xf32> to vector<24xf32>
    %42 = vector.shape_cast %41 : vector<24xf32> to vector<1x24xf32>
    %43 = vector.shape_cast %42 : vector<1x24xf32> to vector<1x1x24xf32>
    %44 = arith.addf %40, %43 : vector<1x1x24xf32>
    %c0_18 = arith.constant 0 : index
    %c0_19 = arith.constant 0 : index
    %c0_20 = arith.constant 0 : index
    %45 = vector.load %arg5[%c0_18, %c0_19, %c0_20] : memref<1x1x24xf32, #tpu.memory_space<vmem>>, vector<1x1x24xf32>
    tpu.vector_store %arg5[%c0_18, %c0_19, %c0_20], %44 {strides = array<i32>} : memref<1x1x24xf32, #tpu.memory_space<vmem>>, vector<1x1x24xf32>,
    %c0_21 = arith.constant 0 : index
    %c0_22 = arith.constant 0 : index
    %c0_23 = arith.constant 0 : index
    %46 = vector.load %arg6[%c0_21, %c0_22, %c0_23] : memref<1x1x24xf32, #tpu.memory_space<vmem>>, vector<1x1x24xf32>
    %cst_24 = arith.constant dense<0.000000e+00> : vector<24xf32>
    %47 = vector.multi_reduction <add>, %39, %cst_24 [0] : vector<32x24xf32> to vector<24xf32>
    %48 = vector.shape_cast %47 : vector<24xf32> to vector<1x24xf32>
    %49 = vector.shape_cast %48 : vector<1x24xf32> to vector<1x1x24xf32>
    %50 = arith.addf %46, %49 : vector<1x1x24xf32>
    %c0_25 = arith.constant 0 : index
    %c0_26 = arith.constant 0 : index
    %c0_27 = arith.constant 0 : index
    %51 = vector.load %arg6[%c0_25, %c0_26, %c0_27] : memref<1x1x24xf32, #tpu.memory_space<vmem>>, vector<1x1x24xf32>
    tpu.vector_store %arg6[%c0_25, %c0_26, %c0_27], %50 {strides = array<i32>} : memref<1x1x24xf32, #tpu.memory_space<vmem>>, vector<1x1x24xf32>,
    %c0_28 = arith.constant 0 : index
    %c0_29 = arith.constant 0 : index
    %c0_30 = arith.constant 0 : index
    %52 = vector.load %arg7[%c0_28, %c0_29, %c0_30] : memref<1x1x24xf32, #tpu.memory_space<vmem>>, vector<1x1x24xf32>
    %53 = arith.mulf %39, %39 : vector<32x24xf32>
    %cst_31 = arith.constant dense<0.000000e+00> : vector<24xf32>
    %54 = vector.multi_reduction <add>, %53, %cst_31 [0] : vector<32x24xf32> to vector<24xf32>
    %55 = vector.shape_cast %54 : vector<24xf32> to vector<1x24xf32>
    %56 = vector.shape_cast %55 : vector<1x24xf32> to vector<1x1x24xf32>
    %57 = arith.addf %52, %56 : vector<1x1x24xf32>
    %c0_32 = arith.constant 0 : index
    %c0_33 = arith.constant 0 : index
    %c0_34 = arith.constant 0 : index
    %58 = vector.load %arg7[%c0_32, %c0_33, %c0_34] : memref<1x1x24xf32, #tpu.memory_space<vmem>>, vector<1x1x24xf32>
    tpu.vector_store %arg7[%c0_32, %c0_33, %c0_34], %57 {strides = array<i32>} : memref<1x1x24xf32, #tpu.memory_space<vmem>>, vector<1x1x24xf32>,
    %59 = arith.subf %24, %20 : vector<32x1xf32>
    %cst_35 = arith.constant 0.000000e+00 : f32
    %60 = vector.broadcast %cst_35 : f32 to vector<32x1xf32>
    %61 = arith.select %7, %59, %60 : vector<32x1xi1>, vector<32x1xf32>
    %c0_36 = arith.constant 0 : index
    %c0_37 = arith.constant 0 : index
    %c0_38 = arith.constant 0 : index
    %62 = vector.load %arg9[%c0_36, %c0_37, %c0_38] : memref<1x1x1xf32, #tpu.memory_space<vmem>>, vector<1x1x1xf32>
    %63 = arith.mulf %61, %61 : vector<32x1xf32>
    %cst_39 = arith.constant dense<0.000000e+00> : vector<1xf32>
    %64 = vector.multi_reduction <add>, %63, %cst_39 [0] : vector<32x1xf32> to vector<1xf32>
    %65 = vector.shape_cast %64 : vector<1xf32> to vector<1x1xf32>
    %66 = vector.shape_cast %65 : vector<1x1xf32> to vector<1x1x1xf32>
    %67 = arith.addf %62, %66 : vector<1x1x1xf32>
    %c0_40 = arith.constant 0 : index
    %c0_41 = arith.constant 0 : index
    %c0_42 = arith.constant 0 : index
    %68 = vector.load %arg9[%c0_40, %c0_41, %c0_42] : memref<1x1x1xf32, #tpu.memory_space<vmem>>, vector<1x1x1xf32>
    tpu.vector_store %arg9[%c0_40, %c0_41, %c0_42], %67 {strides = array<i32>} : memref<1x1x1xf32, #tpu.memory_space<vmem>>, vector<1x1x1xf32>,
    return
  }
  func.func @transform_0(%arg0: i32, %arg1: i32) -> (i32, i32) {
    %c4_i32 = arith.constant 4 : i32
    %0 = arith.muli %arg0, %c4_i32 : i32
    %1 = arith.addi %0, %arg1 : i32
    %c6_i32 = arith.constant 6 : i32
    %2 = arith.minsi %1, %c6_i32 : i32
    %c0_i32 = arith.constant 0 : i32
    %c0_i32_0 = arith.constant 0 : i32
    return %2, %c0_i32 : i32, i32
  }
  func.func @transform_1(%arg0: i32, %arg1: i32) -> (i32, i32) {
    %c4_i32 = arith.constant 4 : i32
    %0 = arith.muli %arg0, %c4_i32 : i32
    %1 = arith.addi %0, %arg1 : i32
    %c6_i32 = arith.constant 6 : i32
    %2 = arith.minsi %1, %c6_i32 : i32
    %c0_i32 = arith.constant 0 : i32
    %c0_i32_0 = arith.constant 0 : i32
    return %2, %c0_i32 : i32, i32
  }
  func.func @transform_2(%arg0: i32, %arg1: i32) -> (i32, i32) {
    %c4_i32 = arith.constant 4 : i32
    %0 = arith.muli %arg0, %c4_i32 : i32
    %1 = arith.addi %0, %arg1 : i32
    %c6_i32 = arith.constant 6 : i32
    %2 = arith.minsi %1, %c6_i32 : i32
    %c0_i32 = arith.constant 0 : i32
    %c0_i32_0 = arith.constant 0 : i32
    return %2, %c0_i32 : i32, i32
  }
  func.func @transform_3(%arg0: i32, %arg1: i32) -> (i32, i32, i32) {
    %c0_i32 = arith.constant 0 : i32
    %c0_i32_0 = arith.constant 0 : i32
    %c0_i32_1 = arith.constant 0 : i32
    return %arg0, %c0_i32, %c0_i32_0 : i32, i32, i32
  }
  func.func @transform_4(%arg0: i32, %arg1: i32) -> (i32, i32, i32) {
    %c0_i32 = arith.constant 0 : i32
    %c0_i32_0 = arith.constant 0 : i32
    %c0_i32_1 = arith.constant 0 : i32
    return %arg0, %c0_i32, %c0_i32_0 : i32, i32, i32
  }
  func.func @transform_5(%arg0: i32, %arg1: i32) -> (i32, i32, i32) {
    %c0_i32 = arith.constant 0 : i32
    %c0_i32_0 = arith.constant 0 : i32
    %c0_i32_1 = arith.constant 0 : i32
    return %arg0, %c0_i32, %c0_i32_0 : i32, i32, i32
  }
  func.func @transform_6(%arg0: i32, %arg1: i32) -> (i32, i32, i32) {
    %c0_i32 = arith.constant 0 : i32
    %c0_i32_0 = arith.constant 0 : i32
    %c0_i32_1 = arith.constant 0 : i32
    return %arg0, %c0_i32, %c0_i32_0 : i32, i32, i32
  }
  func.func @transform_7(%arg0: i32, %arg1: i32) -> (i32, i32, i32) {
    %c0_i32 = arith.constant 0 : i32
    %c0_i32_0 = arith.constant 0 : i32
    %c0_i32_1 = arith.constant 0 : i32
    return %arg0, %c0_i32, %c0_i32_0 : i32, i32, i32
  }
}

</mosaic_0001>

<bundles_post_ra>
// kernel: tpu_custom_call.1
= control target key start
LH: loop header
LB: loop body
LE: loop exit
PB: predicated region body
PF: predicated region fallthrough
CT: control target
= control target key end

     0   :  { %s2166_s0 = inlined_call_operand.hbm [shape: f32[200,24], index: 0, kind: input, shape index: {}]   ;;  %s2167_s1 = inlined_call_operand.hbm [shape: f32[200,1], index: 1, kind: input, shape index: {}]   ;;  %s2168_s2 = inlined_call_operand.hbm [shape: f32[200,24], index: 2, kind: input, shape index: {}]   ;;  %s2169_s3 = inlined_call_operand.hbm [shape: f32[2,1,24], index: 3, kind: output, shape index: {0}]   ;;  %s2170_s4 = inlined_call_operand.hbm [shape: f32[2,1,24], index: 4, kind: output, shape index: {1}]   ;;  %s2171_s5 = inlined_call_operand.hbm [shape: f32[2,1,24], index: 5, kind: output, shape index: {2}]   ;;  %s2172_s6 = inlined_call_operand.hbm [shape: f32[2,1,24], index: 6, kind: output, shape index: {3}]   ;;  %s2173_s7 = inlined_call_operand.hbm [shape: f32[2,1,1], index: 7, kind: output, shape index: {4}]  }
   0x1   :  { %2183 = sst [smem:[#allocation29_spill]] %s2166_s0 }
   0x2   :  { %2184 = sst [smem:[#allocation30_spill]] %s2173_s7 }
   0x3   :  { %13 = vsyncpa [#allocation3], 0 }
   0x4   :  { %15 = vsyncpa [#allocation3 + $0x1], 0 }
   0x5   :  { %16 = vsyncpa [#allocation6], 0 }
   0x6   :  { %18 = vsyncpa [#allocation6 + $0x1], 0 }
   0x7   :  { %19 = vsyncpa [#allocation4], 0 }
   0x8   :  { %21 = vsyncpa [#allocation4 + $0x1], 0 }
   0x9   :  { %22 = vsyncpa [#allocation10], 0 }
   0xa   :  { %24 = vsyncpa [#allocation10 + $0x1], 0 }
   0xb   :  { %25 = vsyncpa [#allocation13], 0 }
   0xc   :  { %27 = vsyncpa [#allocation13 + $0x1], 0  ;;  %s1551_s24 = smov 0   ;;  %s1553_s25 = smov 0  }
   0xd   :  { %s1555_s26 = smov 0   ;;  %s1557_s27 = smov 0  }
   0xe   :  { %s1559_s28 = smov 0   ;;  %s1561_s29 = smov 0  }
   0xf   :  { %s1563_s30 = smov 0   ;;  %s1565_s8 = smov 0  }
  0x10   :  { %s1567_s9 = smov 0   ;;  %s1569_s10 = smov 0  }
  0x11   :  { %s1571_s11 = smov 0  }
  0x12 LB: > { %2185 = sst [smem:[#allocation20_spill]] %s1454_s24  ;;  %s1607_s12 = sadd.s32 4294967295, %s1494_s11   ;;  %s1494_s11 = sphi %s1571_s11, %s33_s11   ;;  %s1490_s10 = sphi %s1569_s10, %s2212_s10   ;;  %s1486_s9 = sphi %s1567_s9, %s2211_s9   ;;  %s1482_s8 = sphi %s1565_s8, %s2210_s8   ;;  %s1478_s30 = sphi %s1563_s30, %s2209_s30   ;;  %s1474_s29 = sphi %s1561_s29, %s2217_s29   ;;  %s1470_s28 = sphi %s1559_s28, %s2216_s28   ;;  %s1466_s27 = sphi %s1557_s27, %s2215_s27   ;;  %s1462_s26 = sphi %s1555_s26, %s2207_s26   ;;  %s1458_s25 = sphi %s1553_s25, %s2214_s25   ;;  %s1454_s24 = sphi %s1551_s24, %s2213_s24  }
  0x13   : > { %2186 = sst [smem:[#allocation21_spill]] %s1462_s26  ;;  %s42_s14 = sadd.s32 1, %s1486_s9 }
  0x14   : > { %2187 = sst [smem:[#allocation22_spill]] %s1486_s9  ;;  %s45_s15 = sadd.s32 1, %s1490_s10 }
  0x15   : > { %2188 = sst [smem:[#allocation23_spill]] %s1490_s10  ;;  %p43_p0 = scmp.ge.s32.totalorder %s42_s14, 4 }
  0x16   : > { %s989_s16 = sshll.u32 %s1490_s10, 2  ;;  %s60_s18 = sadd.s32 1, %s1474_s29 }
  0x17   : > { %s50_s17 = sadd.s32 %s1486_s9, %s989_s16  ;;  %s2219_s14 = smov (%p43_p0, %s42_s14), 0 }
  0x18   : > { %2189 = sst [smem:[#allocation24_spill]] %s2219_s14  ;;  %s2221_s15 = smov (!%p43_p0, %s45_s15), %s1490_s10 }
  0x19   : > { %p51_p1 = scmp.lt.s32.totalorder %s50_s17, 6  ;;  %p67_p2 = scmp.ne.s32.totalorder %s1474_s29, %s1470_s28 }
  0x1a   : > { %p47_p3 = scmp.ge.s32.totalorder %s2221_s15, 2  ;;  %p68_p4 = scmp.eq.s32.totalorder %s1494_s11, 0 }
  0x1b   : > { %s2223_s17 = smov (!%p51_p1, %s50_s17), 6  ;;  %p73_p6 = scmp.ne.s32.totalorder %s1470_s28, %s1466_s27 }
  0x1c   : > { %s2225_s15 = smov (%p47_p3, %s2221_s15), 0  ;;  %p1625_p5 = por %p68_p4, %p67_p2 }
  0x1d   : > { %2190 = sst [smem:[#allocation25_spill]] %s2225_s15  ;;  %s990_s20 = sshll.u32 %s2225_s15, 2 }
  0x1e   : > { %p74_p7 = scmp.eq.s32.totalorder %s1607_s12, 0  ;;  %s54_s21 = sadd.s32 %s990_s20, %s2219_s14 }
  0x1f   : > { %s151_s22 = ssub.s32 %s1490_s10, %s2225_s15  ;;  %p55_p8 = scmp.lt.s32.totalorder %s54_s21, 6 }
  0x20   : > { %p1636_p9 = por %p74_p7, %p73_p6  ;;  %p152_p10 = scmp.eq.s32.totalorder %s151_s22, 0 }
  0x21   : > { %s154_s16 = sadd.s32 1, %s1462_s26  ;;  %s2227_s21 = smov (!%p55_p8, %s54_s21), 6 }
  0x22   : > { %s1642_s13 = scalar_select %p152_p10, %s1462_s26, %s154_s16  }
  0x23   : > { %s57_s9 = ssub.s32 %s2223_s17, %s2227_s21  ;;  %p164_p11 = scmp.ne.s32.totalorder %s1462_s26, %s1458_s25 }
  0x24   : > { %2193 = sst [smem:[#allocation26_spill]] %s1642_s13  ;;  %p58_p12 = scmp.eq.s32.totalorder %s57_s9, 0 }
  0x25   : > { %p165_p13 = scmp.eq.s32.totalorder %s1607_s12, 7  ;;  %p170_p0 = scmp.ne.s32.totalorder %s1458_s25, %s1454_s24 }
  0x26   : > { %s2194_s27 = sadd.s32 4294967294, %s1494_s11   ;;  %p996_p4 = scmp.ge.s32.totalorder %s1494_s11, 8 }
  0x27   : > { %p171_p1 = scmp.eq.s32.totalorder %s2194_s27, 7  ;;  %p1655_p2 = por %p165_p13, %p164_p11 }
  0x28   : > { %s1653_s7 = scalar_select %p58_p12, %s1474_s29, %s60_s18  }
  0x29   : > { %s2196_s20 = scalar_select %p1655_p2, 1, 0 }
  0x2a   : > { %2195 = sst [smem:[#allocation27_spill]] %s1653_s7  ;;  %p1659_p3 = por %p171_p1, %p170_p0 }
  0x2b   : > { %291 = sbr.rel (%p996_p4) target bundleno = 160 (0xa0), region = 16 }
  0x2c   : > { %s2197_s15 = scalar_select %p1659_p3, 1, 0 }
  0x2e   : > { %2198 = sst [smem:[#allocation28_spill]] %s2197_s15 }
  0x32   : > { %294 = sbr.rel (!%p1625_p5) target bundleno = 90 (0x5a), region = 20  ;;  %s295_s9 = sand.u32 (%p1625_p5), 1, %s1474_s29  }
  0x33   : > { %s999_s21 = sshll.u32 (%p1625_p5), %s2223_s17, 2  ;;  %s997_s18 = sshll.u32 (%p1625_p5), %s295_s9, 5 }
  0x34   : > { %s305_s22 = ssub.s32 (%p1625_p5), 25, %s999_s21  ;;  %s1671_s14 = scalar_lea.sflag (%p1625_p5), [#allocation3], %s295_s9 }
  0x35   : > { %p306_p6 = scmp.lt.s32.totalorder (%p1625_p5), %s305_s22, 4  ;;  %s299_s10 = scalar_lea.vmem (%p1625_p5), [#allocation2], %s997_s18 }
  0x39   : > { %s2229_s22 = smov (!%p306_p6, %s305_s22), 4 }
  0x3a   : > { %s1668_s16 = sshll.u32 %s2229_s22, 7 }
  0x3b   : > { %s310_s27 = ssub.s32 512, %s1668_s16 }
  0x3c   : > { %311 = vsyncadd %s1671_s14, %s310_s27  ;;  %p1001_p7 = scmp.ne.s32.totalorder %s1668_s16, 0  ;;  %s1036_s7 = sshll.u32 %s2223_s17, 9 }
  0x3d   : > { %s2199_s0 = sld [smem:[#allocation29_spill]]  ;;  %s316_s9 = sshll.u32 %s299_s10, 4  ;;  %s1681_s9 = int_to_ptr.vmem [resolvable:$true] %s316_s9 }
  0x43   : > { %s1679_s21 = scalar_lea.hbm %s2199_s0, %s1036_s7  ;;  %s1168_s15 = scalar_lea.hbm %s2199_s0, 3200 }
  0x44   : > { %s1164_s18 = scalar_lea.hbm %s1679_s21, %s1668_s16  ;;  %p1169_p12 = scmp.lt.u32.totalorder %s1679_s21, %s2199_s0 }
  0x45   : > { %p1165_p8 = scmp.ne.s32.totalorder %s1679_s21, %s1164_s18  ;;  %p1170_p13 = scmp.lt.u32.totalorder %s1168_s15, %s1164_s18 }
  0x46   : > { %p1172_p1 = scmp.lt.u32.totalorder %s1164_s18, %s1679_s21 }
  0x47   : > { %p1166_p10 = pnand %p1165_p8, %p1001_p7  ;;  %p1171_p0 = por %p1170_p13, %p1169_p12 }
  0x49   : > { %p1167_p11 = pneg %p1166_p10  ;;  %p1173_p4 = por %p1172_p1, %p1171_p0 }
  0x4b   : > { %p1174_p6 = pnand %p1173_p4, %p1167_p11 }
  0x4d   : > { %1177 = shalt.err (!%p1174_p6)
}
  0x4e   : > { %s1178_s7 = scalar_lea.vmem %s1681_s9, %s1668_s16  ;;  %s1496_s10 = smov [#allocation2]  }
  0x4f   : > { %p1179_p8 = scmp.ne.s32.totalorder %s1681_s9, %s1178_s7  ;;  %s1182_s13 = sshll.u32 %s1496_s10, 4  ;;  %s1183_s13 = int_to_ptr.vmem [resolvable:$false] %s1182_s13 }
  0x50   : > { %s1184_s24 = scalar_lea.vmem %s1183_s13, 1024  ;;  %p1185_p2 = scmp.lt.s32.totalorder %s1681_s9, %s1183_s13 }
  0x51   : > { %p1180_p10 = pnand %p1179_p8, %p1001_p7  ;;  %p1186_p12 = scmp.lt.s32.totalorder %s1184_s24, %s1178_s7 }
  0x53   : > { %p1181_p3 = pneg %p1180_p10  ;;  %p1187_p13 = por %p1186_p12, %p1185_p2 }
  0x55   : > { %p1188_p0 = pnand %p1187_p13, %p1181_p3 }
  0x57   : > { %1191 = shalt.err (!%p1188_p0)
}
  0x58   : > { %s1497_s15 = smov 128   ;;  %s1498_s18 = smov 8  }
  0x59   : > { %322 = dma.hbm_to_vmem [thread:$0]  (%p1001_p7), %s1679_s21, %s1668_s16, %s1681_s9, %s1671_s14, %s1497_s15, %s1497_s15, %s1498_s18  }
  0x5a PF: > { %325 = sbr.rel (!%p1625_p5) target bundleno = 125 (0x7d), region = 24  ;;  %s326_s22 = sand.u32 (%p1625_p5), 1, %s1494_s11  }
  0x5b   : > { %s328_s27 = sand.u32 (%p1625_p5), 1, %s1474_s29   ;;  %s1007_s7 = sshll.u32 (%p1625_p5), %s2223_s17, 2 }
  0x5c   : > { %s1005_s26 = sshll.u32 (%p1625_p5), %s328_s27, 5  ;;  %s336_s10 = ssub.s32 (%p1625_p5), 25, %s1007_s7 }
  0x5d   : > { %p337_p2 = scmp.lt.s32.totalorder (%p1625_p5), %s336_s10, 4  ;;  %s1716_s0 = scalar_lea.sflag (%p1625_p5), [#allocation6], %s326_s22 }
  0x5e   : > { %s330_s14 = scalar_lea.vmem (%p1625_p5), [#allocation5], %s1005_s26 }
  0x61   : > { %s2231_s10 = smov (!%p337_p2, %s336_s10), 4 }
  0x62   : > { %s1713_s13 = sshll.u32 %s2231_s10, 7 }
  0x63   : > { %s341_s24 = ssub.s32 512, %s1713_s13 }
  0x64   : > { %342 = vsyncadd %s1716_s0, %s341_s24  ;;  %p1009_p3 = scmp.ne.s32.totalorder %s1713_s13, 0  ;;  %s1037_s16 = sshll.u32 %s2223_s17, 9 }
  0x65   : > { %s1724_s15 = scalar_lea.hbm %s2167_s1, %s1037_s16  ;;  %s347_s18 = sshll.u32 %s330_s14, 4  ;;  %s1726_s18 = int_to_ptr.vmem [resolvable:$true] %s347_s18 }
  0x66   : > { %s1192_s22 = scalar_lea.hbm %s1724_s15, %s1713_s13  ;;  %s1196_s7 = scalar_lea.hbm %s2167_s1, 3200 }
  0x67   : > { %p1193_p7 = scmp.ne.s32.totalorder %s1724_s15, %s1192_s22  ;;  %p1197_p4 = scmp.lt.u32.totalorder %s1724_s15, %s2167_s1 }
  0x68   : > { %p1198_p6 = scmp.lt.u32.totalorder %s1196_s7, %s1192_s22  ;;  %p1200_p10 = scmp.lt.u32.totalorder %s1192_s22, %s1724_s15 }
  0x69   : > { %p1194_p11 = pnand %p1193_p7, %p1009_p3 }
  0x6a   : > { %p1199_p8 = por %p1198_p6, %p1197_p4 }
  0x6b   : > { %p1195_p1 = pneg %p1194_p11 }
  0x6c   : > { %p1201_p12 = por %p1200_p10, %p1199_p8 }
  0x6e   : > { %p1202_p13 = pnand %p1201_p12, %p1195_p1 }
  0x70   : > { %1205 = shalt.err (!%p1202_p13)
}
  0x71   : > { %s1206_s14 = scalar_lea.vmem %s1726_s18, %s1713_s13  ;;  %s1499_s16 = smov [#allocation5]  }
  0x72   : > { %p1207_p0 = scmp.ne.s32.totalorder %s1726_s18, %s1206_s14  ;;  %s1210_s21 = sshll.u32 %s1499_s16, 4  ;;  %s1211_s21 = int_to_ptr.vmem [resolvable:$false] %s1210_s21 }
  0x73   : > { %s1212_s9 = scalar_lea.vmem %s1211_s21, 1024  ;;  %p1213_p11 = scmp.lt.s32.totalorder %s1726_s18, %s1211_s21 }
  0x74   : > { %p1208_p2 = pnand %p1207_p0, %p1009_p3  ;;  %p1214_p4 = scmp.lt.s32.totalorder %s1212_s9, %s1206_s14 }
  0x76   : > { %p1209_p7 = pneg %p1208_p2  ;;  %p1215_p6 = por %p1214_p4, %p1213_p11 }
  0x78   : > { %p1216_p8 = pnand %p1215_p6, %p1209_p7 }
  0x7a   : > { %1219 = shalt.err (!%p1216_p8)
}
  0x7b   : > { %s1500_s22 = smov 128   ;;  %s1501_s27 = smov 8  }
  0x7c   : > { %353 = dma.hbm_to_vmem [thread:$0]  (%p1009_p3), %s1724_s15, %s1713_s13, %s1726_s18, %s1716_s0, %s1500_s22, %s1500_s22, %s1501_s27  }
  0x7d PF: > { %356 = sbr.rel (!%p1625_p5) target bundleno = 160 (0xa0), region = 28  ;;  %s357_s26 = sand.u32 (%p1625_p5), 1, %s1494_s11  }
  0x7e   : > { %s359_s7 = sand.u32 (%p1625_p5), 1, %s1474_s29   ;;  %s1015_s24 = sshll.u32 (%p1625_p5), %s2223_s17, 2 }
  0x7f   : > { %s1013_s10 = sshll.u32 (%p1625_p5), %s359_s7, 5  ;;  %s367_s14 = ssub.s32 (%p1625_p5), 25, %s1015_s24 }
  0x80   : > { %p368_p1 = scmp.lt.s32.totalorder (%p1625_p5), %s367_s14, 4  ;;  %s1761_s9 = scalar_lea.sflag (%p1625_p5), [#allocation6], %s357_s26 }
  0x81   : > { %s361_s0 = scalar_lea.vmem (%p1625_p5), [#allocation7], %s1013_s10 }
  0x84   : > { %s2233_s14 = smov (!%p368_p1, %s367_s14), 4 }
  0x85   : > { %s1758_s16 = sshll.u32 %s2233_s14, 7 }
  0x86   : > { %s372_s21 = ssub.s32 512, %s1758_s16 }
  0x87   : > { %373 = vsyncadd %s1761_s9, %s372_s21  ;;  %p1017_p5 = scmp.ne.s32.totalorder %s1758_s16, 0  ;;  %s1038_s19 = sshll.u32 %s2223_s17, 9 }
  0x88   : > { %s1769_s18 = scalar_lea.hbm %s2168_s2, %s1038_s19  ;;  %s378_s22 = sshll.u32 %s361_s0, 4  ;;  %s1771_s22 = int_to_ptr.vmem [resolvable:$true] %s378_s22 }
  0x89   : > { %s1220_s27 = scalar_lea.hbm %s1769_s18, %s1758_s16  ;;  %s1224_s17 = scalar_lea.hbm %s2168_s2, 3200 }
  0x8a   : > { %p1221_p3 = scmp.ne.s32.totalorder %s1769_s18, %s1220_s27  ;;  %p1225_p13 = scmp.lt.u32.totalorder %s1769_s18, %s2168_s2 }
  0x8b   : > { %p1226_p0 = scmp.lt.u32.totalorder %s1224_s17, %s1220_s27  ;;  %p1228_p7 = scmp.lt.u32.totalorder %s1220_s27, %s1769_s18 }
  0x8c   : > { %p1222_p10 = pnand %p1221_p3, %p1017_p5 }
  0x8d   : > { %p1227_p2 = por %p1226_p0, %p1225_p13 }
  0x8e   : > { %p1223_p12 = pneg %p1222_p10 }
  0x8f   : > { %p1229_p11 = por %p1228_p7, %p1227_p2 }
  0x91   : > { %p1230_p4 = pnand %p1229_p11, %p1223_p12 }
  0x93   : > { %1233 = shalt.err (!%p1230_p4)
}
  0x94   : > { %s1234_s14 = scalar_lea.vmem %s1771_s22, %s1758_s16  ;;  %s1502_s21 = smov [#allocation7]  }
  0x95   : > { %p1235_p6 = scmp.ne.s32.totalorder %s1771_s22, %s1234_s14  ;;  %s1238_s0 = sshll.u32 %s1502_s21, 4  ;;  %s1239_s0 = int_to_ptr.vmem [resolvable:$false] %s1238_s0 }
  0x96   : > { %s1240_s19 = scalar_lea.vmem %s1239_s0, 1024  ;;  %p1241_p3 = scmp.lt.s32.totalorder %s1771_s22, %s1239_s0 }
  0x97   : > { %p1236_p8 = pnand %p1235_p6, %p1017_p5  ;;  %p1242_p10 = scmp.lt.s32.totalorder %s1240_s19, %s1234_s14 }
  0x99   : > { %p1237_p1 = pneg %p1236_p8  ;;  %p1243_p13 = por %p1242_p10, %p1241_p3 }
  0x9b   : > { %p1244_p0 = pnand %p1243_p13, %p1237_p1 }
  0x9d   : > { %1247 = shalt.err (!%p1244_p0)
}
  0x9e   : > { %s1503_s13 = smov 128   ;;  %s1504_s15 = smov 8  }
  0x9f   : > { %384 = dma.hbm_to_vmem [thread:$0]  (%p1017_p5), %s1769_s18, %s1758_s16, %s1771_s22, %s1761_s9, %s1503_s13, %s1503_s13, %s1504_s15  }
  0xa0 PF: > { %p1021_p12 = scmp.ge.s32.totalorder %s1494_s11, 1  ;;  %p386_p2 = scmp.lt.s32.totalorder %s1494_s11, 9 }
  0xa2   : > { %p387_p7 = pnand %p1021_p12, %p386_p2 }
  0xa3   : > { %s392_s27 = sand.u32 (!%p387_p7), 1, %s1470_s28  }
  0xa4   : > { %390 = sbr.rel (%p387_p7) target bundleno = 460 (0x1cc), region = 32  ;;  %s1801_s26 = sshll.u32 (!%p387_p7), %s392_s27, 5 }
  0xa5   : > { %s393_s7 = scalar_lea.sflag (!%p387_p7), [#allocation3], %s392_s27  ;;  %s1804_s17 = scalar_lea.vmem (!%p387_p7), [#allocation2], %s1801_s26 }
  0xab   : > { %1433 = dma.done.wait (%p1636_p9), %s393_s7, 512  }
  0xac   : > { %1435 = vsyncadd (%p1636_p9), %s393_s7, 4294966784  ;;  %s1811_s16 = sand.u32 1, %s1607_s12   ;;  %s1815_s18 = scalar_lea.vmem [#allocation5], %s1801_s26 }
  0xad   : > { %s402_s9 = scalar_lea.sflag [#allocation6], %s1811_s16 }
  0xae   : > { %1437 = dma.done.wait (%p1636_p9), %s402_s9, 1024  }
  0xaf   : > { %1439 = vsyncadd (%p1636_p9), %s402_s9, 4294966272  ;;  %s1025_s22 = sshll.u32 %s1482_s8, 2  ;;  %v500_v0 = vlaneseq  ;;  %vm546_vm0 = vcmask 195584   ;;  %v516_v10 = vld [vmem:[%s1804_s17 + $0x10] sm:$0xff]  ;;  %v514_v12 = vld [vmem:[%s1804_s17] sm:$0xff]  ;;  %s1878_s12 = sand.u32 1, %s1458_s25  }
  0xb0   : > { %s498_s10 = sadd.s32 %s1478_s30, %s1025_s22  ;;  %v540_v11 = vld [vmem:[%s1815_s18 + $0x10] sm:$0xff]  ;;  %v538_v14 = vld [vmem:[%s1815_s18] sm:$0xff]  ;;  %v517_v15 = vld [vmem:[%s1804_s17 + $0x18] sm:$0xff]  ;;  %s414_s23 = scalar_lea.vmem [#allocation7], %s1801_s26 }
  0xb1   : > { %s1026_s24 = sshll.u32 %s498_s10, 5  ;;  %v501_v1 = vshrl.u32 %v500_v0, 7  ;;  %v541_v16 = vld [vmem:[%s1815_s18 + $0x18] sm:$0xff]  ;;  %v515_v21 = vld [vmem:[%s1804_s17 + $0x8] sm:$0xff]  ;;  %v530_v30 = vld [vmem:[%s414_s23] sm:$0xff]  ;;  %s1898_s14 = scalar_lea.vmem [#allocation8], %s1878_s12 }
  0xb2   : > { %v505_v2 = vstv %s1026_s24  ;;  %v539_v22 = vld [vmem:[%s1815_s18 + $0x8] sm:$0xff]  ;;  %v532_v31 = vld [vmem:[%s414_s23 + $0x10] sm:$0xff]  ;;  %v533_v36 = vld [vmem:[%s414_s23 + $0x18] sm:$0xff]  ;;  %s1901_s21 = scalar_lea.vmem [#allocation9], %s1878_s12  ;;  %s1904_s0 = scalar_lea.vmem [#allocation11], %s1878_s12 }
  0xb3   : > { %v503_v3 = vadd.s32 16, %v501_v1  ;;  %v1823_v4 = vadd.s32 %v505_v2, %v501_v1  ;;  %v504_v5 = vadd.s32 24, %v501_v1  ;;  %v502_v6 = vadd.s32 8, %v501_v1  ;;  %v531_v34 = vld [vmem:[%s414_s23 + $0x8] sm:$0xff]  ;;  %s1907_s19 = scalar_lea.vmem [#allocation12], %s1878_s12  ;;  %s1910_s13 = scalar_lea.vmem [#allocation14], %s1878_s12 }
  0xb4   : > { %p1027_p9 = scmp.ne.s32.totalorder %s1478_s30, 0 }
  0xb5   : > { %v1825_v7 = vadd.s32 %v505_v2, %v503_v3  ;;  %vm510_vm1 = vcmp.lt.s32.totalorder %v1823_v4, 200  ;;  %v1828_v8 = vadd.s32 %v505_v2, %v504_v5  ;;  %v1830_v9 = vadd.s32 %v505_v2, %v502_v6 }
  0xb6   : > { %v526_v13 = vsel %vm510_vm1, %v514_v12, 0.0  ;;  %v1850_v19 = vsel %vm510_vm1, %v538_v14, 0.0  ;;  %v534_v32 = vsel %vm510_vm1, %v530_v30, 0.0  ;;  %vm579_vm5 = vcmask (!%p1027_p9), 188416  }
  0xb7   : > { %vm512_vm2 = vcmp.lt.s32.totalorder %v1825_v7, 200  ;;  %vm513_vm3 = vcmp.lt.s32.totalorder %v1828_v8, 200  ;;  %v547_v20 = vsel %vm546_vm0, %v526_v13, 0.0  ;;  %vm511_vm4 = vcmp.lt.s32.totalorder %v1830_v9, 200 }
  0xb8   : > { %v528_v17 = vsel %vm512_vm2, %v516_v10, 0.0  ;;  %v1846_v18 = vsel %vm512_vm2, %v540_v11, 0.0  ;;  %548 = vadd.xlane.f32.xlu0 %v547_v20  ;;  %v529_v24 = vsel %vm513_vm3, %v517_v15, 0.0  ;;  %v1862_v25 = vsel %vm513_vm3, %v541_v16, 0.0 }
  0xb9   : > { %v1856_v23 = vsel %vm546_vm0, %v528_v17, 0.0  ;;  %v527_v26 = vsel %vm511_vm4, %v515_v21, 0.0  ;;  %v1870_v27 = vsel %vm511_vm4, %v539_v22, 0.0  ;;  %v1873_v28 = vsel %vm546_vm0, %v529_v24, 0.0 }
  0xba   : > { %554 = vadd.xlane.f32.xlu1 %v1856_v23  ;;  %v550_v29 = vsel %vm546_vm0, %v527_v26, 0.0  ;;  %v536_v33 = vsel %vm512_vm2, %v532_v31, 0.0  ;;  %v567_v38 = vmul.f32 %v534_v32, %v534_v32  ;;  %v535_v42 = vsel %vm511_vm4, %v531_v34, 0.0 }
  0xbb   : > { %v569_v40 = vmul.f32 %v536_v33, %v536_v33  ;;  %v537_v44 = vsel %vm513_vm3, %v533_v36, 0.0  ;;  %v568_v49 = vmul.f32 %v535_v42, %v535_v42  ;;  %vm583_vm6 = vcmask (!%p1027_p9), 0  }
  0xbc   : > { %551 = vadd.xlane.f32.xlu0 %v550_v29  ;;  %v570_v52 = vmul.f32 %v537_v44, %v537_v44  ;;  %v1505_v58 = vmov (!%p1027_p9), 0.0  }
  0xbd   : > { %580 = vst.msk [vmem:[%s1898_s14] sm:$0x1] (!%p1027_p9), %vm579_vm5, %v1505_v58  ;;  %581 = vst.msk [vmem:[%s1901_s21] sm:$0x1] (!%p1027_p9), %vm579_vm5, %v1505_v58 }
  0xbe   : > { %557 = vadd.xlane.f32.xlu1 %v1873_v28  ;;  %582 = vst.msk [vmem:[%s1904_s0] sm:$0x1] (!%p1027_p9), %vm579_vm5, %v1505_v58 }
  0xbf   : > { %584 = vst.msk [vmem:[%s1910_s13] sm:$0x1] (!%p1027_p9), %vm583_vm6, %v1505_v58 }
 0x145   : > { %v549_v35 = vpop.xlane.xlu0 %548 }
 0x146   : > { %v559_v39 = vmul.f32 0.041666668, %v549_v35 }
 0x147   : > { %v555_v37 = vpop.xlane.xlu1 %554 }
 0x148   : > { %v1885_v41 = vmul.f32 0.041666668, %v555_v37  ;;  %v563_v43 = vmul.f32 %v559_v39, %v559_v39 }
 0x149   : > { %v552_v46 = vpop.xlane.xlu0 %551 }
 0x14a   : > { %v565_v45 = vmul.f32 %v1885_v41, %v1885_v41  ;;  %v571_v47 = vadd.f32 %v567_v38, %v563_v43  ;;  %v560_v50 = vmul.f32 0.041666668, %v552_v46  ;;  %578 = sbr.rel (%p1027_p9) target bundleno = 337 (0x151), region = 48 }
 0x14b   : > { %v558_v48 = vpop.xlane.xlu1 %557 }
 0x14c   : > { %v573_v51 = vadd.f32 %v569_v40, %v565_v45  ;;  %v1893_v53 = vmul.f32 0.041666668, %v558_v48  ;;  %v564_v54 = vmul.f32 %v560_v50, %v560_v50  ;;  %585 = vst.msk [vmem:[%s1907_s19] sm:$0x1] (!%p1027_p9), %vm579_vm5, %v571_v47 }
 0x14e   : > { %v566_v55 = vmul.f32 %v1893_v53, %v1893_v53  ;;  %v572_v56 = vadd.f32 %v568_v49, %v564_v54 }
 0x150   : > { %v574_v57 = vadd.f32 %v570_v52, %v566_v55 }
 0x151 PF: > { %v602_v60 = vadd.f32 %v550_v29, %v547_v20  ;;  %v650_v61 = vsub.f32 %v559_v39, %v1850_v19  ;;  %v651_v62 = vsub.f32 %v560_v50, %v1870_v27  ;;  %v652_v5 = vsub.f32 %v1885_v41, %v1846_v18  ;;  %s1929_s30 = sshll.u32 %s1482_s8, 4  ;;  %s748_s26 = sshll.u32 %s1907_s19, 4  ;;  %s1955_s26 = int_to_ptr.vmem [resolvable:$true] %s748_s26 }
 0x152   : > { %v653_v6 = vsub.f32 %v1893_v53, %v1862_v25  ;;  %s1947_s27 = scalar_lea.hbm %s2172_s6, %s1929_s30  ;;  %s693_s7 = scalar_lea.sflag [#allocation13], %s1811_s16 }
 0x153   : > { %v1028_v59 = vld [vmem:[%s1907_s19] ss:$0 sm:$0xff]  ;;  %v603_v3 = vadd.f32 %v602_v60, %v1856_v23  ;;  %v654_v10 = vsel %vm510_vm1, %v650_v61, 0.0  ;;  %v655_v24 = vsel %vm511_vm4, %v651_v62, 0.0  ;;  %v656_v25 = vsel %vm512_vm2, %v652_v5, 0.0  ;;  %s1248_s17 = scalar_lea.vmem %s1955_s26, 16 }
 0x154   : > { %v593_v63 = vsub.f32 %v571_v47, %v1028_v59  ;;  %v594_v0 = vsub.f32 %v572_v56, %v1028_v59  ;;  %v595_v1 = vsub.f32 %v573_v51, %v1028_v59  ;;  %v596_v2 = vsub.f32 %v574_v57, %v1028_v59  ;;  %p1249_p5 = scmp.ne.s32.totalorder %s1955_s26, %s1248_s17  ;;  %p2200_p11 = scmp.ne.s32.totalorder %s2196_s20, 0 }
 0x155   : > { %v604_v19 = vadd.f32 %v603_v3, %v1873_v28  ;;  %s1506_s9 = smov [#allocation12]  }
 0x156   : > { %v597_v11 = vsel %vm510_vm1, %v593_v63, 0.0  ;;  %v598_v12 = vsel %vm511_vm4, %v594_v0, 0.0  ;;  %v599_v13 = vsel %vm512_vm2, %v595_v1, 0.0  ;;  %v600_v14 = vsel %vm513_vm3, %v596_v2, 0.0  ;;  %p1250_p4 = pnand %p1249_p5, %p2200_p11  ;;  %s1252_s18 = sshll.u32 %s1506_s9, 4  ;;  %s1253_s18 = int_to_ptr.vmem [resolvable:$false] %s1252_s18 }
 0x157   : > { %v615_v15 = vsel %vm546_vm0, %v597_v11, 0.0  ;;  %v616_v16 = vsel %vm546_vm0, %v598_v12, 0.0  ;;  %v618_v17 = vsel %vm546_vm0, %v599_v13, 0.0  ;;  %v620_v18 = vsel %vm546_vm0, %v600_v14, 0.0  ;;  %s1254_s22 = scalar_lea.vmem %s1253_s18, 32  ;;  %p1255_p8 = scmp.lt.s32.totalorder %s1955_s26, %s1253_s18 }
 0x158   : > { %v617_v4 = vadd.f32 %v616_v16, %v615_v15  ;;  %v631_v20 = vmul.f32 %v597_v11, %v597_v11  ;;  %v632_v21 = vmul.f32 %v598_v12, %v598_v12  ;;  %v633_v22 = vmul.f32 %v599_v13, %v599_v13  ;;  %p1251_p6 = pneg %p1250_p4  ;;  %p1256_p1 = scmp.lt.s32.totalorder %s1254_s22, %s1248_s17 }
 0x159   : > { %v634_v23 = vmul.f32 %v600_v14, %v600_v14  ;;  %v605_v27 = vrot.slane %v604_v19, 4 }
 0x15a   : > { %v619_v26 = vadd.f32 %v618_v17, %v617_v4  ;;  %v635_v28 = vsel %vm546_vm0, %v631_v20, 0.0  ;;  %v636_v29 = vsel %vm546_vm0, %v632_v21, 0.0  ;;  %p1257_p3 = por %p1256_p1, %p1255_p8 }
 0x15c   : > { %p1258_p10 = pnand %p1257_p3, %p1251_p6 }
 0x15e   : > { %1261 = shalt.err (!%p1258_p10)
}
 0x15f   : > { %s1262_s10 = scalar_lea.hbm %s1947_s27, 16  ;;  %s1266_s19 = scalar_lea.hbm %s2172_s6, 32 }
 0x160   : > { %p1263_p13 = scmp.ne.s32.totalorder %s1947_s27, %s1262_s10  ;;  %p1267_p2 = scmp.lt.u32.totalorder %s1947_s27, %s2172_s6 }
 0x161   : > { %p1268_p7 = scmp.lt.u32.totalorder %s1266_s19, %s1262_s10  ;;  %p1270_p5 = scmp.lt.u32.totalorder %s1262_s10, %s1947_s27 }
 0x162   : > { %p1264_p0 = pnand %p1263_p13, %p2200_p11 }
 0x163   : > { %p1269_p9 = por %p1268_p7, %p1267_p2 }
 0x164   : > { %p1265_p12 = pneg %p1264_p0 }
 0x165   : > { %p1271_p4 = por %p1270_p5, %p1269_p9 }
 0x167   : > { %p1272_p6 = pnand %p1271_p4, %p1265_p12 }
 0x169   : > { %1275 = shalt.err (!%p1272_p6)
}
 0x16a   : > { %1045 = dma.vmem_to_hbm [thread:$0]  (%p2200_p11), %s1955_s26, 16, %s1947_s27, %s693_s7   ;;  %v637_v7 = vadd.f32 %v636_v29, %v635_v28  ;;  %v638_v9 = vsel %vm546_vm0, %v633_v22, 0.0  ;;  %v640_v30 = vsel %vm546_vm0, %v634_v23, 0.0  ;;  %v657_v31 = vsel %vm513_vm3, %v653_v6, 0.0  ;;  %v601_v52 = vld [vmem:[%s1898_s14] sm:$0x1] }
 0x16b   : > { %v621_v32 = vadd.f32 %v620_v18, %v619_v26  ;;  %v606_v33 = vadd.f32 %v605_v27, %v604_v19  ;;  %v659_v34 = vmul.f32 %v654_v10, %v654_v10  ;;  %v660_v35 = vmul.f32 %v655_v24, %v655_v24  ;;  %s709_s27 = sshll.u32 %s1898_s14, 4  ;;  %s1993_s9 = scalar_lea.hbm %s2169_s3, %s1929_s30  ;;  %v614_v61 = vld [vmem:[%s1901_s21] sm:$0x1]  ;;  %s1995_s27 = int_to_ptr.vmem [resolvable:$true] %s709_s27 }
 0x16c   : > { %v639_v36 = vadd.f32 %v638_v9, %v637_v7  ;;  %v661_v37 = vmul.f32 %v656_v25, %v656_v25  ;;  %v662_v38 = vmul.f32 %v657_v31, %v657_v31  ;;  %vm663_vm7 = vcmask 7168   ;;  %s722_s18 = sshll.u32 %s1901_s21, 4  ;;  %s735_s22 = sshll.u32 %s1904_s0, 4  ;;  %s2033_s18 = int_to_ptr.vmem [resolvable:$true] %s722_s18  ;;  %s2045_s22 = int_to_ptr.vmem [resolvable:$true] %s735_s22 }
 0x16d   : > { %v622_v39 = vrot.slane %v621_v32, 4  ;;  %v607_v40 = vrot.slane %v606_v33, 2  ;;  %v664_v41 = vsel %vm663_vm7, %v659_v34, 0.0  ;;  %v665_v42 = vsel %vm663_vm7, %v660_v35, 0.0  ;;  %s681_s10 = scalar_lea.sflag [#allocation4], %s1878_s12  ;;  %s1276_s24 = scalar_lea.vmem %s1995_s27, 16 }
 0x16e   : > { %v641_v43 = vadd.f32 %v640_v30, %v639_v36  ;;  %v666_v44 = vadd.f32 %v665_v42, %v664_v41  ;;  %v667_v45 = vsel %vm663_vm7, %v661_v37, 0.0  ;;  %v669_v47 = vsel %vm663_vm7, %v662_v38, 0.0  ;;  %p1277_p8 = scmp.ne.s32.totalorder %s1995_s27, %s1276_s24  ;;  %s1507_s23 = smov [#allocation8]  }
 0x16f   : > { %v623_v46 = vadd.f32 %v622_v39, %v621_v32  ;;  %v608_v8 = vadd.f32 %v607_v40, %v606_v33  ;;  %vm612_vm8 = vcmask 188416   ;;  %s1280_s19 = sshll.u32 %s1507_s23, 4  ;;  %s1281_s19 = int_to_ptr.vmem [resolvable:$false] %s1280_s19 }
 0x170   : > { %v642_v48 = vrot.slane %v641_v43, 4  ;;  %v668_v49 = vadd.f32 %v667_v45, %v666_v44  ;;  %p1278_p1 = pnand %p1277_p8, %p2200_p11  ;;  %s1282_s8 = scalar_lea.vmem %s1281_s19, 32 }
 0x171   : > { %v624_v50 = vrot.slane %v623_v46, 2  ;;  %v609_v51 = vrot.slane %v608_v8, 1  ;;  %p1283_p10 = scmp.lt.s32.totalorder %s1995_s27, %s1281_s19  ;;  %p1284_p13 = scmp.lt.s32.totalorder %s1282_s8, %s1276_s24 }
 0x172   : > { %v643_v53 = vadd.f32 %v642_v48, %v641_v43  ;;  %v670_v54 = vadd.f32 %v669_v47, %v668_v49  ;;  %p1279_p3 = pneg %p1278_p1 }
 0x173   : > { %v625_v55 = vadd.f32 %v624_v50, %v623_v46  ;;  %v610_v56 = vadd.f32 %v609_v51, %v608_v8  ;;  %p1285_p0 = por %p1284_p13, %p1283_p10 }
 0x174   : > { %v644_v57 = vrot.slane %v643_v53, 2  ;;  %v671_v58 = vrot.slane %v670_v54, 4 }
 0x175   : > { %v626_v59 = vrot.slane %v625_v55, 1  ;;  %v611_v60 = vadd.f32 %v610_v56, %v601_v52  ;;  %p1286_p12 = pnand %p1285_p0, %p1279_p3 }
 0x176   : > { %v645_v62 = vadd.f32 %v644_v57, %v643_v53  ;;  %v672_v63 = vadd.f32 %v671_v58, %v670_v54 }
 0x177   : > { %v627_v0 = vadd.f32 %v626_v59, %v625_v55  ;;  %613 = vst.msk [vmem:[%s1898_s14] sm:$0x1] %vm612_vm8, %v611_v60 }
 0x178   : > { %v646_v1 = vrot.slane %v645_v62, 1  ;;  %v673_v2 = vrot.slane %v672_v63, 2 }
 0x179   : > { %1289 = shalt.err (!%p1286_p12)
}
 0x17a   : > { %s1290_s12 = scalar_lea.hbm %s1993_s9, 16  ;;  %s1294_s26 = scalar_lea.hbm %s2169_s3, 32 }
 0x17b   : > { %p1291_p2 = scmp.ne.s32.totalorder %s1993_s9, %s1290_s12  ;;  %p1295_p5 = scmp.lt.u32.totalorder %s1993_s9, %s2169_s3 }
 0x17c   : > { %p1296_p4 = scmp.lt.u32.totalorder %s1294_s26, %s1290_s12  ;;  %p1298_p8 = scmp.lt.u32.totalorder %s1290_s12, %s1993_s9 }
 0x17d   : > { %p1292_p7 = pnand %p1291_p2, %p2200_p11 }
 0x17e   : > { %p1297_p6 = por %p1296_p4, %p1295_p5 }
 0x17f   : > { %p1293_p9 = pneg %p1292_p7 }
 0x180   : > { %p1299_p1 = por %p1298_p8, %p1297_p6 }
 0x182   : > { %p1300_p3 = pnand %p1299_p1, %p1293_p9 }
 0x184   : > { %1303 = shalt.err (!%p1300_p3)
}
 0x185   : > { %1042 = dma.vmem_to_hbm [thread:$0]  (%p2200_p11), %s1995_s27, 16, %s1993_s9, %s681_s10   ;;  %v628_v3 = vadd.f32 %v627_v0, %v614_v61  ;;  %v630_v5 = vld [vmem:[%s1904_s0] sm:$0x1]  ;;  %v647_v6 = vadd.f32 %v646_v1, %v645_v62  ;;  %v674_v10 = vadd.f32 %v673_v2, %v672_v63 }
 0x186   : > { %s2029_s8 = scalar_lea.hbm %s2170_s4, %s1929_s30  ;;  %s2041_s27 = scalar_lea.hbm %s2171_s5, %s1929_s30 }
 0x187   : > { %629 = vst.msk [vmem:[%s1901_s21] sm:$0x1] %vm612_vm8, %v628_v3  ;;  %v648_v11 = vadd.f32 %v647_v6, %v630_v5  ;;  %v675_v12 = vrot.slane %v674_v10, 1  ;;  %s685_s9 = scalar_lea.sflag [#allocation10], %s1811_s16  ;;  %s1304_s10 = scalar_lea.vmem %s2033_s18, 16 }
 0x188   : > { %p1305_p10 = scmp.ne.s32.totalorder %s2033_s18, %s1304_s10  ;;  %s1508_s15 = smov [#allocation9]  }
 0x189   : > { %s1308_s26 = sshll.u32 %s1508_s15, 4  ;;  %s1309_s26 = int_to_ptr.vmem [resolvable:$false] %s1308_s26 }
 0x18a   : > { %p1306_p13 = pnand %p1305_p10, %p2200_p11  ;;  %s1310_s21 = scalar_lea.vmem %s1309_s26, 32 }
 0x18b   : > { %p1311_p12 = scmp.lt.s32.totalorder %s2033_s18, %s1309_s26  ;;  %p1312_p2 = scmp.lt.s32.totalorder %s1310_s21, %s1304_s10 }
 0x18c   : > { %p1307_p0 = pneg %p1306_p13 }
 0x18d   : > { %p1313_p7 = por %p1312_p2, %p1311_p12 }
 0x18f   : > { %p1314_p9 = pnand %p1313_p7, %p1307_p0 }
 0x191   : > { %1317 = shalt.err (!%p1314_p9)
}
 0x192   : > { %s1318_s17 = scalar_lea.hbm %s2029_s8, 16  ;;  %s1322_s19 = scalar_lea.hbm %s2170_s4, 32 }
 0x193   : > { %p1319_p5 = scmp.ne.s32.totalorder %s2029_s8, %s1318_s17  ;;  %p1323_p8 = scmp.lt.u32.totalorder %s2029_s8, %s2170_s4 }
 0x194   : > { %p1324_p1 = scmp.lt.u32.totalorder %s1322_s19, %s1318_s17  ;;  %p1326_p10 = scmp.lt.u32.totalorder %s1318_s17, %s2029_s8 }
 0x195   : > { %p1320_p4 = pnand %p1319_p5, %p2200_p11 }
 0x196   : > { %p1325_p3 = por %p1324_p1, %p1323_p8 }
 0x197   : > { %p1321_p6 = pneg %p1320_p4 }
 0x198   : > { %p1327_p13 = por %p1326_p10, %p1325_p3 }
 0x19a   : > { %p1328_p0 = pnand %p1327_p13, %p1321_p6 }
 0x19c   : > { %1331 = shalt.err (!%p1328_p0)
}
 0x19d   : > { %1043 = dma.vmem_to_hbm [thread:$0]  (%p2200_p11), %s2033_s18, 16, %s2029_s8, %s685_s9   ;;  %v658_v13 = vld [vmem:[%s1910_s13] sm:$0x1]  ;;  %649 = vst.msk [vmem:[%s1904_s0] sm:$0x1] %vm612_vm8, %v648_v11  ;;  %v676_v14 = vadd.f32 %v675_v12, %v674_v10  ;;  %vm678_vm9 = vcmask 0  }
 0x19e   : > { %s761_s10 = sshll.u32 %s1910_s13, 4  ;;  %s1332_s15 = scalar_lea.vmem %s2045_s22, 16  ;;  %s762_s10 = int_to_ptr.vmem [resolvable:$true] %s761_s10 }
 0x19f   : > { %p1333_p12 = scmp.ne.s32.totalorder %s2045_s22, %s1332_s15  ;;  %s1509_s26 = smov [#allocation11]  }
 0x1a0   : > { %s1336_s21 = sshll.u32 %s1509_s26, 4  ;;  %s1337_s21 = int_to_ptr.vmem [resolvable:$false] %s1336_s21 }
 0x1a1   : > { %p1334_p2 = pnand %p1333_p12, %p2200_p11  ;;  %s1338_s17 = scalar_lea.vmem %s1337_s21, 32 }
 0x1a2   : > { %p1339_p9 = scmp.lt.s32.totalorder %s2045_s22, %s1337_s21  ;;  %p1340_p5 = scmp.lt.s32.totalorder %s1338_s17, %s1332_s15 }
 0x1a3   : > { %p1335_p7 = pneg %p1334_p2 }
 0x1a4   : > { %p1341_p4 = por %p1340_p5, %p1339_p9 }
 0x1a6   : > { %p1342_p6 = pnand %p1341_p4, %p1335_p7 }
 0x1a8   : > { %1345 = shalt.err (!%p1342_p6)
}
 0x1a9   : > { %s1346_s0 = scalar_lea.hbm %s2041_s27, 16  ;;  %s1350_s23 = scalar_lea.hbm %s2171_s5, 32 }
 0x1aa   : > { %p1347_p8 = scmp.ne.s32.totalorder %s2041_s27, %s1346_s0  ;;  %p1351_p10 = scmp.lt.u32.totalorder %s2041_s27, %s2171_s5 }
 0x1ab   : > { %p1352_p13 = scmp.lt.u32.totalorder %s1350_s23, %s1346_s0  ;;  %p1354_p12 = scmp.lt.u32.totalorder %s1346_s0, %s2041_s27 }
 0x1ac   : > { %p1348_p1 = pnand %p1347_p8, %p2200_p11 }
 0x1ad   : > { %p1353_p0 = por %p1352_p13, %p1351_p10 }
 0x1ae   : > { %p1349_p3 = pneg %p1348_p1 }
 0x1af   : > { %p1355_p2 = por %p1354_p12, %p1353_p0 }
 0x1b1   : > { %p1356_p7 = pnand %p1355_p2, %p1349_p3 }
 0x1b3   : > { %1359 = shalt.err (!%p1356_p7)
}
 0x1b4   : > { %1044 = dma.vmem_to_hbm [thread:$0]  (%p2200_p11), %s2045_s22, 16, %s2041_s27, %s685_s9   ;;  %v677_v15 = vadd.f32 %v676_v14, %v658_v13 }
 0x1b5   : > { %s2201_s15 = sld [smem:[#allocation30_spill]]  ;;  %s1360_s21 = scalar_lea.vmem %s762_s10, 16 }
 0x1b6   : > { %679 = vst.msk [vmem:[%s1910_s13] sm:$0x1] %vm678_vm9, %v677_v15  ;;  %p1361_p9 = scmp.ne.s32.totalorder %s762_s10, %s1360_s21  ;;  %s1510_s17 = smov [#allocation14]  }
 0x1b7   : > { %s1364_s0 = sshll.u32 %s1510_s17, 4  ;;  %s1365_s0 = int_to_ptr.vmem [resolvable:$false] %s1364_s0 }
 0x1b8   : > { %p1362_p5 = pnand %p1361_p9, %p2200_p11  ;;  %s1366_s18 = scalar_lea.vmem %s1365_s0, 32 }
 0x1b9   : > { %p1367_p6 = scmp.lt.s32.totalorder %s762_s10, %s1365_s0  ;;  %p1368_p8 = scmp.lt.s32.totalorder %s1366_s18, %s1360_s21 }
 0x1ba   : > { %p1363_p4 = pneg %p1362_p5 }
 0x1bb   : > { %s2102_s26 = scalar_lea.hbm %s2201_s15, %s1929_s30  ;;  %p1369_p1 = por %p1368_p8, %p1367_p6 }
 0x1bd   : > { %p1370_p3 = pnand %p1369_p1, %p1363_p4 }
 0x1bf   : > { %1373 = shalt.err (!%p1370_p3)
}
 0x1c0   : > { %s1374_s13 = scalar_lea.hbm %s2102_s26, 16  ;;  %s1378_s27 = scalar_lea.hbm %s2201_s15, 32 }
 0x1c1   : > { %p1375_p10 = scmp.ne.s32.totalorder %s2102_s26, %s1374_s13  ;;  %p1379_p12 = scmp.lt.u32.totalorder %s2102_s26, %s2201_s15 }
 0x1c2   : > { %p1380_p2 = scmp.lt.u32.totalorder %s1378_s27, %s1374_s13  ;;  %p1382_p9 = scmp.lt.u32.totalorder %s1374_s13, %s2102_s26 }
 0x1c3   : > { %p1376_p13 = pnand %p1375_p10, %p2200_p11 }
 0x1c4   : > { %p1381_p7 = por %p1380_p2, %p1379_p12 }
 0x1c5   : > { %p1377_p0 = pneg %p1376_p13 }
 0x1c6   : > { %p1383_p5 = por %p1382_p9, %p1381_p7 }
 0x1c8   : > { %p1384_p4 = pnand %p1383_p5, %p1377_p0 }
 0x1ca   : > { %1387 = shalt.err (!%p1384_p4)
}
 0x1cb   : > { %1046 = dma.vmem_to_hbm [thread:$0]  (%p2200_p11), %s762_s10, 16, %s2102_s26, %s693_s7  }
 0x1cc PF: > { %s2202_s23 = sld [smem:[#allocation20_spill]]  ;;  %s2203_s24 = sld [smem:[#allocation28_spill]] }
 0x1cd   : > { %p1068_p6 = scmp.ge.s32.totalorder %s1494_s11, 2 }
 0x1d2   : > { %s773_s19 = sand.u32 1, %s2202_s23   ;;  %p2204_p8 = scmp.ne.s32.totalorder %s2203_s24, 0 }
 0x1d3   : > { %s774_s12 = scalar_lea.sflag [#allocation4], %s773_s19 }
 0x1d4   : > { %p1053_p1 = pnand %p1068_p6, %p2204_p8 }
 0x1d6   : > { %1441 = dma.done.wait (!%p1053_p1), %s774_s12, 16  }
 0x1d7   : > { %1443 = vsyncadd (!%p1053_p1), %s774_s12, 4294967280  ;;  %s2205_s14 = sadd.s32 4294967294, %s1494_s11  }
 0x1d8   : > { %s781_s21 = sand.u32 1, %s2205_s14  }
 0x1d9   : > { %s782_s17 = scalar_lea.sflag [#allocation10], %s781_s21 }
 0x1da   : > { %1445 = dma.done.wait (!%p1053_p1), %s782_s17, 32  }
 0x1db   : > { %1447 = vsyncadd (!%p1053_p1), %s782_s17, 4294967264  ;;  %s798_s20 = scalar_lea.sflag [#allocation13], %s781_s21 }
 0x1dc   : > { %1449 = dma.done.wait (!%p1053_p1), %s798_s20, 32  }
 0x1dd   : > { %1451 = vsyncadd (!%p1053_p1), %s798_s20, 4294967264  ;;  %s33_s11 = sadd.s32 1, %s1494_s11   ;;  %s2206_s16 = sld [smem:[#allocation21_spill]] }
 0x1de   : > { %p30_p11 = scmp.ge.s32.totalorder %s33_s11, 10   ;;  %s2207_s26 = sld [smem:[#allocation26_spill]] }
 0x1df   : > { %s2208_s7 = sld [smem:[#allocation27_spill]]  ;;  %s2209_s30 = sld [smem:[#allocation22_spill]] }
 0x1e0   : > { %s2210_s8 = sld [smem:[#allocation23_spill]]  ;;  %s2211_s9 = sld [smem:[#allocation24_spill]] }
 0x1e1   : > { %s2212_s10 = sld [smem:[#allocation25_spill]]  ;;  %s2213_s24 = smov %s1458_s25 }
 0x1e2   : > { %s2215_s27 = smov %s1470_s28  ;;  %s2216_s28 = smov %s1474_s29 }
 0x1e3   : > { %s2214_s25 = smov %s2206_s16  ;;  %32 = sbr.rel (!%p30_p11) target bundleno = 18 (0x12), region = 169 }
 0x1e5   : > { %s2217_s29 = smov %s2208_s7 }
 0x1ea   :  { %810 = vsyncpa [#allocation3], 1 }
 0x1eb   :  { %812 = vsyncpa [#allocation3 + $0x1], 1 }
 0x1ec   :  { %813 = vsyncpa [#allocation6], 1 }
 0x1ed   :  { %815 = vsyncpa [#allocation6 + $0x1], 1 }
 0x1ee   :  { %816 = vsyncpa [#allocation4], 1 }
 0x1ef   :  { %818 = vsyncpa [#allocation4 + $0x1], 1 }
 0x1f0   :  { %819 = vsyncpa [#allocation10], 1 }
 0x1f1   :  { %821 = vsyncpa [#allocation10 + $0x1], 1 }
 0x1f2   :  { %822 = vsyncpa [#allocation13], 1 }
 0x1f3   :  { %824 = vsyncpa [#allocation13 + $0x1], 1 }

</bundles_post_ra>
